<compile_context>
chip_gen: v7x
topology: tpu7x:2x2x1
jax: 0.10.0
libtpu: 0.0.40
codegen_flags: <defaults>
</compile_context>

<pallas_src>
import functools

import jax
import jax.numpy as jnp
from jax.experimental import pallas as pl
from jax.experimental.pallas import tpu as pltpu


def _vae_kernel(zpad,
                x_ref, eps_ref,
                w1_ref, b1_ref, w2_ref, b2_ref, w3_ref, b3_ref,
                w4_ref, b4_ref, w5_ref, b5_ref, w6_ref, b6_ref,
                y_ref, mlv_ref):
    f32 = jnp.float32
    bf16 = jnp.bfloat16

    # x arrives fp32 (no separate wrapper cast pass); cast on the VPU here.
    x = x_ref[...].astype(bf16)  # (TB, x_dim)

    # ---------------- encoder ----------------
    h = jnp.dot(x, w1_ref[...], preferred_element_type=f32) + b1_ref[...]
    h = jnp.maximum(h, 0.0)
    h = jnp.dot(h.astype(bf16), w2_ref[...], preferred_element_type=f32) + b2_ref[...]
    h = jnp.maximum(h, 0.0)
    # fused fc31 | fc32, lane-padded to (h_dim2, 2*zpad): mu in lanes [0, zpad),
    # logvar in lanes [zpad, 2*zpad). Slice boundary is 128-lane aligned.
    mlv = jnp.dot(h.astype(bf16), w3_ref[...], preferred_element_type=f32) + b3_ref[...]
    mu = mlv[:, :zpad]
    logvar = mlv[:, zpad:]

    # ---------------- sampling (reparameterization) ----------------
    std = jnp.exp(0.5 * logvar)
    z = eps_ref[...] * std + mu          # padded lanes are exactly zero

    # ---------------- decoder ----------------
    d = jnp.dot(z.astype(bf16), w4_ref[...], preferred_element_type=f32) + b4_ref[...]
    d = jnp.maximum(d, 0.0)
    d = jnp.dot(d.astype(bf16), w5_ref[...], preferred_element_type=f32) + b5_ref[...]
    d = jnp.maximum(d, 0.0)
    logits = jnp.dot(d.astype(bf16), w6_ref[...], preferred_element_type=f32) + b6_ref[...]

    # sigmoid = 1 / (1 + exp(-x)); exp + approx reciprocal both live on the EUP
    # slot. Saturates correctly at 0/1 for large |x|.
    y = pl.reciprocal(1.0 + jnp.exp(-logits), approx=True)
    y_ref[...] = y.astype(bf16)          # bf16 writeback halves y HBM traffic
    mlv_ref[...] = mlv


def init_vae_params(key, x_dim, h_dim1, h_dim2, z_dim):
    """Deterministic parameter init. Weights are stored as (in, out)."""
    dims = [
        ("fc1", x_dim, h_dim1),
        ("fc2", h_dim1, h_dim2),
        ("fc31", h_dim2, z_dim),
        ("fc32", h_dim2, z_dim),
        ("fc4", z_dim, h_dim2),
        ("fc5", h_dim2, h_dim1),
        ("fc6", h_dim1, x_dim),
    ]
    params = {}
    for name, fan_in, fan_out in dims:
        key, kw, kb = jax.random.split(key, 3)
        bound = 1.0 / (fan_in ** 0.5)  # matches nn.Linear default init range
        params[name + "_w"] = jax.random.uniform(
            kw, (fan_in, fan_out), jnp.float32, -bound, bound)
        params[name + "_b"] = jax.random.uniform(
            kb, (1, fan_out), jnp.float32, -bound, bound)
    return params


def _round_up(a, b):
    return (a + b - 1) // b * b


def _cdiv(a, b):
    return -(-a // b)


@functools.partial(jax.jit, static_argnames=("n_channels", "n_rows", "n_cols"))
def vae_forward(x_nchw, eps, params, *, n_channels, n_rows, n_cols):
    B = x_nchw.shape[0]
    x_dim = n_channels * n_rows * n_cols
    z_dim = params["fc31_w"].shape[1]
    h_dim1 = params["fc1_w"].shape[1]
    h_dim2 = params["fc2_w"].shape[1]

    bf16 = jnp.bfloat16
    f32 = jnp.float32

    # Lane padding target for the z-sized tensors (keeps stores unmasked and
    # the mu/logvar split tile-aligned).
    ZPAD = _round_up(z_dim, 128)

    # torch.flatten(x, start_dim=1) -- a free view, NO dtype-cast HBM pass.
    x_flat = x_nchw.reshape(B, x_dim)

    # eps is tiny (B x z_dim); lane-pad it to ZPAD with zeros.
    eps_pad = jnp.pad(eps.astype(f32), ((0, 0), (0, ZPAD - z_dim)))

    # Batch tile: multiple of 16 sublanes (bf16-friendly), capped at 512, with
    # >= 2 grid steps whenever B allows (megacore + pipeline overlap) and
    # minimal last-block waste. No explicit batch padding: the ragged last
    # block's out-of-bounds rows are masked on writeback.
    TB_MAX = 512
    n_tiles = max(2, _cdiv(B, TB_MAX)) if B > 16 else 1
    TB = min(TB_MAX, _round_up(_cdiv(B, n_tiles), 16))
    grid = (_cdiv(B, TB),)

    def pad_cols(a, n):
        return jnp.pad(a, ((0, 0), (0, n - a.shape[1])))

    # Fused fc31 | fc32, each lane-padded to ZPAD columns (zeros).
    w3 = jnp.concatenate(
        [pad_cols(params["fc31_w"], ZPAD), pad_cols(params["fc32_w"], ZPAD)], axis=1)
    b3 = jnp.concatenate(
        [pad_cols(params["fc31_b"], ZPAD), pad_cols(params["fc32_b"], ZPAD)], axis=1)
    # fc4 rows padded to ZPAD (zero rows for the padded z lanes).
    w4 = jnp.pad(params["fc4_w"], ((0, ZPAD - z_dim), (0, 0)))

    weights = [
        params["fc1_w"].astype(bf16), params["fc1_b"].astype(f32),
        params["fc2_w"].astype(bf16), params["fc2_b"].astype(f32),
        w3.astype(bf16), b3.astype(f32),
        w4.astype(bf16), params["fc4_b"].astype(f32),
        params["fc5_w"].astype(bf16), params["fc5_b"].astype(f32),
        params["fc6_w"].astype(bf16), params["fc6_b"].astype(f32),
    ]

    def batch_spec(dim):
        # TODO(synk): on v7x sweep pipeline_mode=pl.Buffered(3) here.
        return pl.BlockSpec((TB, dim), lambda i: (i, 0))

    def resident_spec(arr):
        # Constant block index -> stays resident in VMEM across grid steps.
        return pl.BlockSpec(arr.shape, lambda i: (0, 0))

    in_specs = ([batch_spec(x_dim), batch_spec(ZPAD)]
                + [resident_spec(w) for w in weights])
    out_specs = (batch_spec(x_dim), batch_spec(2 * ZPAD))

    weight_bytes = sum(int(w.size) * w.dtype.itemsize for w in weights)
    flops = 2 * B * (x_dim * h_dim1 + h_dim1 * h_dim2 + h_dim2 * 2 * ZPAD
                     + ZPAD * h_dim2 + h_dim2 * h_dim1 + h_dim1 * x_dim)
    transcendentals = B * (ZPAD + x_dim)          # exp(0.5*logvar) + sigmoid exp
    bytes_accessed = (B * x_dim * 4               # x in (fp32)
                      + B * ZPAD * 4              # eps in
                      + B * x_dim * 2             # y out (bf16)
                      + B * 2 * ZPAD * 4          # mu|logvar out
                      + weight_bytes)

    # Explicit VMEM budget derived from the actual tiles (+headroom); floored
    # at 32 MiB (covers v5e's 16 MiB default), capped at v7x's 64 MiB physical.
    tile_io_bytes = 2 * TB * (x_dim * 4 + ZPAD * 4 + x_dim * 2 + 2 * ZPAD * 4)
    act_bytes = TB * 4 * (h_dim1 + h_dim2 + 2 * ZPAD + ZPAD
                          + h_dim2 + h_dim1 + x_dim)
    vmem_limit = min(64 << 20,
                     max(32 << 20,
                         2 * (tile_io_bytes + 2 * weight_bytes + act_bytes)))

    y_flat, mlv = pl.pallas_call(
        functools.partial(_vae_kernel, ZPAD),
        grid=grid,
        in_specs=in_specs,
        out_specs=out_specs,
        out_shape=(
            jax.ShapeDtypeStruct((B, x_dim), bf16),
            jax.ShapeDtypeStruct((B, 2 * ZPAD), f32),
        ),
        compiler_params=pltpu.CompilerParams(
            dimension_semantics=("parallel",),
            vmem_limit_bytes=int(vmem_limit)),
        cost_estimate=pl.CostEstimate(
            flops=int(flops),
            transcendentals=int(transcendentals),
            bytes_accessed=int(bytes_accessed)),
    )(x_flat, eps_pad, *weights)

    y = y_flat.reshape(B, n_channels, n_rows, n_cols)
    mu = mlv[:, :z_dim]
    logvar = mlv[:, ZPAD:ZPAD + z_dim]
    return y, mu, logvar


if __name__ == "__main__":
    # Small shapes consistent with the module's forward.
    batch = 2
    n_channels, n_rows, n_cols = 1, 16, 16
    x_dim = n_channels * n_rows * n_cols  # 256
    h_dim1, h_dim2, z_dim = 128, 64, 16

    key = jax.random.PRNGKey(0)
    k_params, k_x, k_eps = jax.random.split(key, 3)

    params = init_vae_params(k_params, x_dim, h_dim1, h_dim2, z_dim)

    # Input image batch (NCHW), values in [0, 1] like typical VAE inputs.
    x = jax.random.uniform(k_x, (batch, n_channels, n_rows, n_cols), jnp.float32)
    # eps plays the role of torch.randn_like(std) in sampling().
    eps = jax.random.normal(k_eps, (batch, z_dim), jnp.float32)

    y, mu, logvar = vae_forward(
        x, eps, params, n_channels=n_channels, n_rows=n_rows, n_cols=n_cols)
    jax.block_until_ready((y, mu, logvar))

    # Sanity check against a pure-JAX reference of the same math
    # (same bf16 operands / fp32 accumulation as the kernel).
    def ref_forward(x, eps, p):
        bf16 = jnp.bfloat16

        def lin(a, w, b):
            return jnp.dot(a.astype(bf16), w.astype(bf16),
                           preferred_element_type=jnp.float32) + b

        h = jnp.maximum(lin(x.reshape(batch, -1), p["fc1_w"], p["fc1_b"]), 0.0)
        h = jnp.maximum(lin(h, p["fc2_w"], p["fc2_b"]), 0.0)
        mu_r = lin(h, p["fc31_w"], p["fc31_b"])
        lv_r = lin(h, p["fc32_w"], p["fc32_b"])
        z = eps * jnp.exp(0.5 * lv_r) + mu_r
        d = jnp.maximum(lin(z, p["fc4_w"], p["fc4_b"]), 0.0)
        d = jnp.maximum(lin(d, p["fc5_w"], p["fc5_b"]), 0.0)
        y_r = jax.nn.sigmoid(lin(d, p["fc6_w"], p["fc6_b"]))
        return (y_r.reshape(batch, n_channels, n_rows, n_cols), mu_r, lv_r)

    y_ref, mu_ref, lv_ref = ref_forward(x, eps, params)
    assert jnp.allclose(y.astype(jnp.float32), y_ref, atol=2e-2, rtol=2e-2)
    assert jnp.allclose(mu, mu_ref, atol=2e-2, rtol=2e-2)
    assert jnp.allclose(logvar, lv_ref, atol=2e-2, rtol=2e-2)
    assert y.shape == (batch, n_channels, n_rows, n_cols)
    assert mu.shape == (batch, z_dim) and logvar.shape == (batch, z_dim)

    print("KERNEL_OK")
</pallas_src>

<mosaic_0001>
module attributes {stable_mosaic.version = 11 : i64} {
  func.func @_vae_kernel(%arg0: i32, %arg1: memref<16x256xf32, #tpu.memory_space<vmem>>, %arg2: memref<16x128xf32, #tpu.memory_space<vmem>>, %arg3: memref<256x128xbf16, #tpu.memory_space<vmem>>, %arg4: memref<1x128xf32, #tpu.memory_space<vmem>>, %arg5: memref<128x64xbf16, #tpu.memory_space<vmem>>, %arg6: memref<1x64xf32, #tpu.memory_space<vmem>>, %arg7: memref<64x256xbf16, #tpu.memory_space<vmem>>, %arg8: memref<1x256xf32, #tpu.memory_space<vmem>>, %arg9: memref<128x64xbf16, #tpu.memory_space<vmem>>, %arg10: memref<1x64xf32, #tpu.memory_space<vmem>>, %arg11: memref<64x128xbf16, #tpu.memory_space<vmem>>, %arg12: memref<1x128xf32, #tpu.memory_space<vmem>>, %arg13: memref<128x256xbf16, #tpu.memory_space<vmem>>, %arg14: memref<1x256xf32, #tpu.memory_space<vmem>>, %arg15: memref<16x256xbf16, #tpu.memory_space<vmem>>, %arg16: memref<16x256xf32, #tpu.memory_space<vmem>>) attributes {dimension_semantics = [#tpu.dimension_semantics<parallel>], iteration_bounds = array<i64: 1>, scalar_prefetch = 0 : i64, scratch_operands = 0 : i64, tpu.core_type = #tpu.core_type<tc>, window_params = [{transform_indices = @transform_0, window_bounds = array<i64: 16, 256>}, {transform_indices = @transform_1, window_bounds = array<i64: 16, 128>}, {pipeline_mode = #tpu.pipeline_mode<synchronous>, transform_indices = @transform_2, window_bounds = array<i64: 256, 128>}, {pipeline_mode = #tpu.pipeline_mode<synchronous>, transform_indices = @transform_3, window_bounds = array<i64: 1, 128>}, {pipeline_mode = #tpu.pipeline_mode<synchronous>, transform_indices = @transform_4, window_bounds = array<i64: 128, 64>}, {pipeline_mode = #tpu.pipeline_mode<synchronous>, transform_indices = @transform_5, window_bounds = array<i64: 1, 64>}, {pipeline_mode = #tpu.pipeline_mode<synchronous>, transform_indices = @transform_6, window_bounds = array<i64: 64, 256>}, {pipeline_mode = #tpu.pipeline_mode<synchronous>, transform_indices = @transform_7, window_bounds = array<i64: 1, 256>}, {pipeline_mode = #tpu.pipeline_mode<synchronous>, transform_indices = @transform_8, window_bounds = array<i64: 128, 64>}, {pipeline_mode = #tpu.pipeline_mode<synchronous>, transform_indices = @transform_9, window_bounds = array<i64: 1, 64>}, {pipeline_mode = #tpu.pipeline_mode<synchronous>, transform_indices = @transform_10, window_bounds = array<i64: 64, 128>}, {pipeline_mode = #tpu.pipeline_mode<synchronous>, transform_indices = @transform_11, window_bounds = array<i64: 1, 128>}, {pipeline_mode = #tpu.pipeline_mode<synchronous>, transform_indices = @transform_12, window_bounds = array<i64: 128, 256>}, {pipeline_mode = #tpu.pipeline_mode<synchronous>, transform_indices = @transform_13, window_bounds = array<i64: 1, 256>}, {transform_indices = @transform_14, window_bounds = array<i64: 16, 256>}, {transform_indices = @transform_15, window_bounds = array<i64: 16, 256>}]} {
    %c0 = arith.constant 0 : index
    %c0_0 = arith.constant 0 : index
    %0 = vector.load %arg1[%c0, %c0_0] : memref<16x256xf32, #tpu.memory_space<vmem>>, vector<16x256xf32>
    %1 = arith.truncf %0 : vector<16x256xf32> to vector<16x256xbf16>
    %c0_1 = arith.constant 0 : index
    %c0_2 = arith.constant 0 : index
    %2 = vector.load %arg3[%c0_1, %c0_2] : memref<256x128xbf16, #tpu.memory_space<vmem>>, vector<256x128xbf16>
    %cst = arith.constant dense<0.000000e+00> : vector<16x128xf32>
    %3 = tpu.matmul %1, %2, %cst {dimension_numbers = #tpu.dot_dimension_numbers<[1], [0], [0], [1], [0, 0, 1, 1], [], []>} : vector<16x256xbf16>, vector<256x128xbf16>, vector<16x128xf32> -> vector<16x128xf32>
    %c0_3 = arith.constant 0 : index
    %c0_4 = arith.constant 0 : index
    %4 = vector.load %arg4[%c0_3, %c0_4] : memref<1x128xf32, #tpu.memory_space<vmem>>, vector<1x128xf32>
    %5 = vector.broadcast %4 : vector<1x128xf32> to vector<16x128xf32>
    %6 = arith.addf %3, %5 : vector<16x128xf32>
    %cst_5 = arith.constant 0.000000e+00 : f32
    %7 = vector.broadcast %cst_5 : f32 to vector<16x128xf32>
    %8 = arith.maximumf %6, %7 : vector<16x128xf32>
    %9 = arith.truncf %8 : vector<16x128xf32> to vector<16x128xbf16>
    %c0_6 = arith.constant 0 : index
    %c0_7 = arith.constant 0 : index
    %10 = vector.load %arg5[%c0_6, %c0_7] : memref<128x64xbf16, #tpu.memory_space<vmem>>, vector<128x64xbf16>
    %cst_8 = arith.constant dense<0.000000e+00> : vector<16x64xf32>
    %11 = tpu.matmul %9, %10, %cst_8 {dimension_numbers = #tpu.dot_dimension_numbers<[1], [0], [0], [1], [0, 0, 1, 1], [], []>} : vector<16x128xbf16>, vector<128x64xbf16>, vector<16x64xf32> -> vector<16x64xf32>
    %c0_9 = arith.constant 0 : index
    %c0_10 = arith.constant 0 : index
    %12 = vector.load %arg6[%c0_9, %c0_10] : memref<1x64xf32, #tpu.memory_space<vmem>>, vector<1x64xf32>
    %13 = vector.broadcast %12 : vector<1x64xf32> to vector<16x64xf32>
    %14 = arith.addf %11, %13 : vector<16x64xf32>
    %cst_11 = arith.constant 0.000000e+00 : f32
    %15 = vector.broadcast %cst_11 : f32 to vector<16x64xf32>
    %16 = arith.maximumf %14, %15 : vector<16x64xf32>
    %17 = arith.truncf %16 : vector<16x64xf32> to vector<16x64xbf16>
    %c0_12 = arith.constant 0 : index
    %c0_13 = arith.constant 0 : index
    %18 = vector.load %arg7[%c0_12, %c0_13] : memref<64x256xbf16, #tpu.memory_space<vmem>>, vector<64x256xbf16>
    %cst_14 = arith.constant dense<0.000000e+00> : vector<16x256xf32>
    %19 = tpu.matmul %17, %18, %cst_14 {dimension_numbers = #tpu.dot_dimension_numbers<[1], [0], [0], [1], [0, 0, 1, 1], [], []>} : vector<16x64xbf16>, vector<64x256xbf16>, vector<16x256xf32> -> vector<16x256xf32>
    %c0_15 = arith.constant 0 : index
    %c0_16 = arith.constant 0 : index
    %20 = vector.load %arg8[%c0_15, %c0_16] : memref<1x256xf32, #tpu.memory_space<vmem>>, vector<1x256xf32>
    %21 = vector.broadcast %20 : vector<1x256xf32> to vector<16x256xf32>
    %22 = arith.addf %19, %21 : vector<16x256xf32>
    %23 = vector.extract_strided_slice %22 {offsets = [0, 0], sizes = [16, 128], strides = [1, 1]} : vector<16x256xf32> to vector<16x128xf32>
    %24 = vector.extract_strided_slice %22 {offsets = [0, 128], sizes = [16, 128], strides = [1, 1]} : vector<16x256xf32> to vector<16x128xf32>
    %cst_17 = arith.constant 5.000000e-01 : f32
    %25 = vector.broadcast %cst_17 : f32 to vector<16x128xf32>
    %26 = arith.mulf %25, %24 : vector<16x128xf32>
    %27 = math.exp %26 : vector<16x128xf32>
    %c0_18 = arith.constant 0 : index
    %c0_19 = arith.constant 0 : index
    %28 = vector.load %arg2[%c0_18, %c0_19] : memref<16x128xf32, #tpu.memory_space<vmem>>, vector<16x128xf32>
    %29 = arith.mulf %28, %27 : vector<16x128xf32>
    %30 = arith.addf %29, %23 : vector<16x128xf32>
    %31 = arith.truncf %30 : vector<16x128xf32> to vector<16x128xbf16>
    %c0_20 = arith.constant 0 : index
    %c0_21 = arith.constant 0 : index
    %32 = vector.load %arg9[%c0_20, %c0_21] : memref<128x64xbf16, #tpu.memory_space<vmem>>, vector<128x64xbf16>
    %cst_22 = arith.constant dense<0.000000e+00> : vector<16x64xf32>
    %33 = tpu.matmul %31, %32, %cst_22 {dimension_numbers = #tpu.dot_dimension_numbers<[1], [0], [0], [1], [0, 0, 1, 1], [], []>} : vector<16x128xbf16>, vector<128x64xbf16>, vector<16x64xf32> -> vector<16x64xf32>
    %c0_23 = arith.constant 0 : index
    %c0_24 = arith.constant 0 : index
    %34 = vector.load %arg10[%c0_23, %c0_24] : memref<1x64xf32, #tpu.memory_space<vmem>>, vector<1x64xf32>
    %35 = vector.broadcast %34 : vector<1x64xf32> to vector<16x64xf32>
    %36 = arith.addf %33, %35 : vector<16x64xf32>
    %cst_25 = arith.constant 0.000000e+00 : f32
    %37 = vector.broadcast %cst_25 : f32 to vector<16x64xf32>
    %38 = arith.maximumf %36, %37 : vector<16x64xf32>
    %39 = arith.truncf %38 : vector<16x64xf32> to vector<16x64xbf16>
    %c0_26 = arith.constant 0 : index
    %c0_27 = arith.constant 0 : index
    %40 = vector.load %arg11[%c0_26, %c0_27] : memref<64x128xbf16, #tpu.memory_space<vmem>>, vector<64x128xbf16>
    %cst_28 = arith.constant dense<0.000000e+00> : vector<16x128xf32>
    %41 = tpu.matmul %39, %40, %cst_28 {dimension_numbers = #tpu.dot_dimension_numbers<[1], [0], [0], [1], [0, 0, 1, 1], [], []>} : vector<16x64xbf16>, vector<64x128xbf16>, vector<16x128xf32> -> vector<16x128xf32>
    %c0_29 = arith.constant 0 : index
    %c0_30 = arith.constant 0 : index
    %42 = vector.load %arg12[%c0_29, %c0_30] : memref<1x128xf32, #tpu.memory_space<vmem>>, vector<1x128xf32>
    %43 = vector.broadcast %42 : vector<1x128xf32> to vector<16x128xf32>
    %44 = arith.addf %41, %43 : vector<16x128xf32>
    %cst_31 = arith.constant 0.000000e+00 : f32
    %45 = vector.broadcast %cst_31 : f32 to vector<16x128xf32>
    %46 = arith.maximumf %44, %45 : vector<16x128xf32>
    %47 = arith.truncf %46 : vector<16x128xf32> to vector<16x128xbf16>
    %c0_32 = arith.constant 0 : index
    %c0_33 = arith.constant 0 : index
    %48 = vector.load %arg13[%c0_32, %c0_33] : memref<128x256xbf16, #tpu.memory_space<vmem>>, vector<128x256xbf16>
    %cst_34 = arith.constant dense<0.000000e+00> : vector<16x256xf32>
    %49 = tpu.matmul %47, %48, %cst_34 {dimension_numbers = #tpu.dot_dimension_numbers<[1], [0], [0], [1], [0, 0, 1, 1], [], []>} : vector<16x128xbf16>, vector<128x256xbf16>, vector<16x256xf32> -> vector<16x256xf32>
    %c0_35 = arith.constant 0 : index
    %c0_36 = arith.constant 0 : index
    %50 = vector.load %arg14[%c0_35, %c0_36] : memref<1x256xf32, #tpu.memory_space<vmem>>, vector<1x256xf32>
    %51 = vector.broadcast %50 : vector<1x256xf32> to vector<16x256xf32>
    %52 = arith.addf %49, %51 : vector<16x256xf32>
    %cst_37 = arith.constant 0.000000e+00 : f32
    %53 = vector.broadcast %cst_37 : f32 to vector<16x256xf32>
    %54 = arith.subf %53, %52 : vector<16x256xf32>
    %55 = math.exp %54 : vector<16x256xf32>
    %cst_38 = arith.constant 1.000000e+00 : f32
    %56 = vector.broadcast %cst_38 : f32 to vector<16x256xf32>
    %57 = arith.addf %56, %55 : vector<16x256xf32>
    %58 = tpu.reciprocal %57 {approx = true} : vector<16x256xf32> -> vector<16x256xf32>
    %59 = arith.truncf %58 : vector<16x256xf32> to vector<16x256xbf16>
    %c0_39 = arith.constant 0 : index
    %c0_40 = arith.constant 0 : index
    %60 = vector.load %arg15[%c0_39, %c0_40] : memref<16x256xbf16, #tpu.memory_space<vmem>>, vector<16x256xbf16>
    tpu.vector_store %arg15[%c0_39, %c0_40], %59 {strides = array<i32>} : memref<16x256xbf16, #tpu.memory_space<vmem>>, vector<16x256xbf16>,
    %c0_41 = arith.constant 0 : index
    %c0_42 = arith.constant 0 : index
    %61 = vector.load %arg16[%c0_41, %c0_42] : memref<16x256xf32, #tpu.memory_space<vmem>>, vector<16x256xf32>
    tpu.vector_store %arg16[%c0_41, %c0_42], %22 {strides = array<i32>} : memref<16x256xf32, #tpu.memory_space<vmem>>, vector<16x256xf32>,
    return
  }
  func.func @transform_0(%arg0: i32) -> (i32, i32) {
    %c0_i32 = arith.constant 0 : i32
    %c0_i32_0 = arith.constant 0 : i32
    return %arg0, %c0_i32 : i32, i32
  }
  func.func @transform_1(%arg0: i32) -> (i32, i32) {
    %c0_i32 = arith.constant 0 : i32
    %c0_i32_0 = arith.constant 0 : i32
    return %arg0, %c0_i32 : i32, i32
  }
  func.func @transform_2(%arg0: i32) -> (i32, i32) {
    %c0_i32 = arith.constant 0 : i32
    %c0_i32_0 = arith.constant 0 : i32
    %c0_i32_1 = arith.constant 0 : i32
    return %c0_i32, %c0_i32_0 : i32, i32
  }
  func.func @transform_3(%arg0: i32) -> (i32, i32) {
    %c0_i32 = arith.constant 0 : i32
    %c0_i32_0 = arith.constant 0 : i32
    %c0_i32_1 = arith.constant 0 : i32
    return %c0_i32, %c0_i32_0 : i32, i32
  }
  func.func @transform_4(%arg0: i32) -> (i32, i32) {
    %c0_i32 = arith.constant 0 : i32
    %c0_i32_0 = arith.constant 0 : i32
    %c0_i32_1 = arith.constant 0 : i32
    return %c0_i32, %c0_i32_0 : i32, i32
  }
  func.func @transform_5(%arg0: i32) -> (i32, i32) {
    %c0_i32 = arith.constant 0 : i32
    %c0_i32_0 = arith.constant 0 : i32
    %c0_i32_1 = arith.constant 0 : i32
    return %c0_i32, %c0_i32_0 : i32, i32
  }
  func.func @transform_6(%arg0: i32) -> (i32, i32) {
    %c0_i32 = arith.constant 0 : i32
    %c0_i32_0 = arith.constant 0 : i32
    %c0_i32_1 = arith.constant 0 : i32
    return %c0_i32, %c0_i32_0 : i32, i32
  }
  func.func @transform_7(%arg0: i32) -> (i32, i32) {
    %c0_i32 = arith.constant 0 : i32
    %c0_i32_0 = arith.constant 0 : i32
    %c0_i32_1 = arith.constant 0 : i32
    return %c0_i32, %c0_i32_0 : i32, i32
  }
  func.func @transform_8(%arg0: i32) -> (i32, i32) {
    %c0_i32 = arith.constant 0 : i32
    %c0_i32_0 = arith.constant 0 : i32
    %c0_i32_1 = arith.constant 0 : i32
    return %c0_i32, %c0_i32_0 : i32, i32
  }
  func.func @transform_9(%arg0: i32) -> (i32, i32) {
    %c0_i32 = arith.constant 0 : i32
    %c0_i32_0 = arith.constant 0 : i32
    %c0_i32_1 = arith.constant 0 : i32
    return %c0_i32, %c0_i32_0 : i32, i32
  }
  func.func @transform_10(%arg0: i32) -> (i32, i32) {
    %c0_i32 = arith.constant 0 : i32
    %c0_i32_0 = arith.constant 0 : i32
    %c0_i32_1 = arith.constant 0 : i32
    return %c0_i32, %c0_i32_0 : i32, i32
  }
  func.func @transform_11(%arg0: i32) -> (i32, i32) {
    %c0_i32 = arith.constant 0 : i32
    %c0_i32_0 = arith.constant 0 : i32
    %c0_i32_1 = arith.constant 0 : i32
    return %c0_i32, %c0_i32_0 : i32, i32
  }
  func.func @transform_12(%arg0: i32) -> (i32, i32) {
    %c0_i32 = arith.constant 0 : i32
    %c0_i32_0 = arith.constant 0 : i32
    %c0_i32_1 = arith.constant 0 : i32
    return %c0_i32, %c0_i32_0 : i32, i32
  }
  func.func @transform_13(%arg0: i32) -> (i32, i32) {
    %c0_i32 = arith.constant 0 : i32
    %c0_i32_0 = arith.constant 0 : i32
    %c0_i32_1 = arith.constant 0 : i32
    return %c0_i32, %c0_i32_0 : i32, i32
  }
  func.func @transform_14(%arg0: i32) -> (i32, i32) {
    %c0_i32 = arith.constant 0 : i32
    %c0_i32_0 = arith.constant 0 : i32
    return %arg0, %c0_i32 : i32, i32
  }
  func.func @transform_15(%arg0: i32) -> (i32, i32) {
    %c0_i32 = arith.constant 0 : i32
    %c0_i32_0 = arith.constant 0 : i32
    return %arg0, %c0_i32 : i32, i32
  }
}

</mosaic_0001>

<bundles_post_ra>
// kernel: vae_forward.1
= control target key start
LH: loop header
LB: loop body
LE: loop exit
PB: predicated region body
PF: predicated region fallthrough
CT: control target
= control target key end

     0   :  { %v1376_v2 = vmov 0.0   ;;  %v71_v12 = vlaneseq  ;;  %vm1377_vm0 = vmmov 0   ;;  %v1378_v57 = vmov 0   ;;  %s1725_s0 = inlined_call_operand.vmem [shape: f32[2,256], index: 0, kind: input, shape index: {}]   ;;  %s1726_s1 = inlined_call_operand.vmem [shape: f32[2,128], index: 1, kind: input, shape index: {}]   ;;  %s1727_s2 = inlined_call_operand.vmem [shape: bf16[256,128], index: 2, kind: input, shape index: {}]   ;;  %s1728_s3 = inlined_call_operand.vmem [shape: f32[1,128], index: 3, kind: input, shape index: {}]   ;;  %s1729_s4 = inlined_call_operand.vmem [shape: bf16[128,64], index: 4, kind: input, shape index: {}]   ;;  %s1730_s5 = inlined_call_operand.vmem [shape: f32[1,64], index: 5, kind: input, shape index: {}]   ;;  %s1731_s6 = inlined_call_operand.vmem [shape: bf16[64,256], index: 6, kind: input, shape index: {}]   ;;  %s1732_s7 = inlined_call_operand.vmem [shape: f32[1,256], index: 7, kind: input, shape index: {}]   ;;  %s1733_s8 = inlined_call_operand.vmem [shape: bf16[128,64], index: 8, kind: input, shape index: {}]   ;;  %s1734_s9 = inlined_call_operand.vmem [shape: f32[1,64], index: 9, kind: input, shape index: {}]   ;;  %s1735_s10 = inlined_call_operand.vmem [shape: bf16[64,128], index: 10, kind: input, shape index: {}]   ;;  %s1736_s11 = inlined_call_operand.vmem [shape: f32[1,128], index: 11, kind: input, shape index: {}]   ;;  %s1737_s12 = inlined_call_operand.vmem [shape: bf16[128,256], index: 12, kind: input, shape index: {}]   ;;  %s1738_s13 = inlined_call_operand.vmem [shape: f32[1,256], index: 13, kind: input, shape index: {}]   ;;  %s1739_s14 = inlined_call_operand.vmem [shape: bf16[2,256], index: 14, kind: output, shape index: {0}]   ;;  %s1740_s15 = inlined_call_operand.vmem [shape: f32[2,256], index: 15, kind: output, shape index: {1}]  }
   0x1   :  { %v1276_v0 = vld [vmem:[%s1727_s2 + $0x40] sm:$0xff]   ;;  %1219 = vmatprep.subr.bf16.mxu1 %v1376_v2  ;;  %v1278_v3 = vld [vmem:[%s1727_s2 + $0x48] sm:$0xff]   ;;  %v1280_v5 = vld [vmem:[%s1727_s2 + $0x50] sm:$0xff]   ;;  %1235 = vmatprep.mubr.msk.bf16.mxu1 %vm1377_vm0, %v1376_v2  ;;  %vm462_vm1 = vcmask 523264  }
   0x2   :  { %v1277_v1 = vld [vmem:[%s1727_s2] sm:$0xff]   ;;  %1174 = vmatprep.subr.bf16.mxu0 %v1276_v0  ;;  %v1279_v4 = vld [vmem:[%s1727_s2 + $0x8] sm:$0xff]   ;;  %v1281_v6 = vld [vmem:[%s1727_s2 + $0x10] sm:$0xff]   ;;  %v1506_v17 = vshrl.u32 %v71_v12, 7 }
   0x3   :  { %1175 = vmatpush3.bf16.msra.mxu0 %v1277_v1  ;;  %v1282_v7 = vld [vmem:[%s1727_s2 + $0x58] sm:$0xff]   ;;  %v1284_v9 = vld [vmem:[%s1727_s2 + $0x60] sm:$0xff]   ;;  %v1286_v11 = vld [vmem:[%s1727_s2 + $0x68] sm:$0xff]  }
   0x4   :  { %1176 = vmatprep.subr.bf16.mxu0 %v1278_v3  ;;  %v1283_v8 = vld [vmem:[%s1727_s2 + $0x18] sm:$0xff]   ;;  %v1285_v10 = vld [vmem:[%s1727_s2 + $0x20] sm:$0xff]   ;;  %v1287_v13 = vld [vmem:[%s1727_s2 + $0x28] sm:$0xff]  }
   0x5   :  { %v1288_v14 = vld [vmem:[%s1727_s2 + $0x70] sm:$0xff]   ;;  %v1372_v15 = vld.sshfl [vmem:[%s1725_s0] sm:$0xff pattern:$0x76325410]  ;;  %v1297_v22 = vld [vmem:[%s1729_s4 + $0x8] sm:$0xff]  }
   0x6   :  { %v1373_v16 = vld.sshfl [vmem:[%s1725_s0 + $0x8] sm:$0xff pattern:$0x76325410]  ;;  %v1374_v18 = vld.sshfl [vmem:[%s1725_s0 + $0x10] sm:$0xff pattern:$0x76325410] }
   0x7   :  { %1177 = vmatpush3.bf16.msra.mxu0 %v1279_v4  ;;  %v1296_v19 = vld [vmem:[%s1729_s4] sm:$0xff]   ;;  %v1289_v20 = vld [vmem:[%s1727_s2 + $0x30] sm:$0xff]   ;;  %v1375_v21 = vld.sshfl [vmem:[%s1725_s0 + $0x18] sm:$0xff pattern:$0x76325410]  ;;  %v83_v26 = vcombine.high %v1372_v15, %v1373_v16  ;;  %v82_v28 = vcombine.low %v1372_v15, %v1373_v16  ;;  %v414_v15 = vsub.s32 0, %v1506_v17 }
   0x8   :  { %1178 = vmatprep.subr.bf16.mxu0 %v1280_v5  ;;  %1220 = vmatpush3.bf16.msra.mxu1 %v1296_v19  ;;  %v1290_v23 = vld [vmem:[%s1727_s2 + $0x78] sm:$0xff]   ;;  %v1298_v24 = vld [vmem:[%s1729_s4 + $0x10] sm:$0xff]   ;;  %v101_v27 = vcombine.high %v1374_v18, %v1375_v21  ;;  %v100_v29 = vcombine.low %v1374_v18, %v1375_v21  ;;  %v1300_v33 = vld [vmem:[%s1729_s4 + $0x20] sm:$0xff]   ;;  %v418_v18 = vsub.s32 1, %v1506_v17 }
   0x9   :  { %1221 = vmatprep.subr.bf16.mxu1 %v1376_v2  ;;  %v1291_v25 = vld [vmem:[%s1727_s2 + $0x38] sm:$0xff]   ;;  %v1301_v34 = vld [vmem:[%s1729_s4 + $0x28] sm:$0xff]   ;;  %v1302_v35 = vld [vmem:[%s1729_s4 + $0x30] sm:$0xff]  }
   0xa   :  { %v1299_v30 = vld [vmem:[%s1729_s4 + $0x18] sm:$0xff]   ;;  %v107_v31 = vpack.c.bf16 %v101_v27, %v83_v26  ;;  %v106_v32 = vpack.c.bf16 %v100_v29, %v82_v28  ;;  %v1306_v37 = vld [vmem:[%s1731_s6 + $0x4] ss:$8 sps:$4 sm:$0xff]   ;;  %v1098_v39 = vld [vmem:[%s1728_s3] ss:$0 sm:$0xff] }
   0xb   :  { %1179 = vmatpush3.bf16.msra.mxu0 %v1281_v6  ;;  %v1303_v36 = vld [vmem:[%s1729_s4 + $0x38] sm:$0xff]   ;;  %v1304_v49 = vld [vmem:[%s1731_s6] ss:$8 sps:$4 sm:$0xff]   ;;  %v1312_v53 = vld [vmem:[%s1731_s6 + $0x24] ss:$8 sps:$4 sm:$0xff]  }
   0xc   :  { %1180 = vmatprep.subr.bf16.mxu0 %v1282_v7  ;;  %1222 = vmatpush3.bf16.msra.mxu1 %v1297_v22  ;;  %v1309_v51 = vld [vmem:[%s1731_s6 + $0x14] ss:$8 sps:$4 sm:$0xff]   ;;  %v1307_v52 = vld [vmem:[%s1731_s6 + $0x10] ss:$8 sps:$4 sm:$0xff]   ;;  %v1310_v54 = vld [vmem:[%s1731_s6 + $0x20] ss:$8 sps:$4 sm:$0xff]  }
   0xd   :  { %1223 = vmatprep.subr.bf16.mxu1 %v1376_v2  ;;  %275 = vmatprep.mubr.bf16.mxu0 %v107_v31  ;;  %v1315_v55 = vld [vmem:[%s1731_s6 + $0x34] ss:$8 sps:$4 sm:$0xff]   ;;  %v1313_v56 = vld [vmem:[%s1731_s6 + $0x30] ss:$8 sps:$4 sm:$0xff]   ;;  %v1115_v58 = vld [vmem:[%s1730_s5] ss:$0 sm:$0xff] }
   0xe   :  { %v1316_v4 = vld [vmem:[%s1733_s8] sm:$0xff]   ;;  %v1317_v6 = vld [vmem:[%s1733_s8 + $0x8] sm:$0xff]   ;;  %v1318_v7 = vld [vmem:[%s1733_s8 + $0x10] sm:$0xff]  }
   0xf   :  { %1181 = vmatpush3.bf16.msra.mxu0 %v1283_v8  ;;  %v1319_v8 = vld [vmem:[%s1733_s8 + $0x18] sm:$0xff]   ;;  %v410_v16 = vld [vmem:[%s1732_s7] sm:$0x3] }
  0x10   :  { %1182 = vmatprep.subr.bf16.mxu0 %v1284_v9  ;;  %1224 = vmatpush3.bf16.msra.mxu1 %v1298_v24  ;;  %v1320_v9 = vld [vmem:[%s1733_s8 + $0x20] sm:$0xff]   ;;  %v1323_v12 = vld [vmem:[%s1733_s8 + $0x38] sm:$0xff]   ;;  %v415_v19 = vrot.slane %v410_v16, %v414_v15 }
  0x11   :  { %1225 = vmatprep.subr.bf16.mxu1 %v1376_v2 }
  0x13   :  { %1183 = vmatpush3.bf16.msra.mxu0 %v1285_v10  ;;  %v1321_v10 = vld [vmem:[%s1733_s8 + $0x28] sm:$0xff]  }
  0x14   :  { %1184 = vmatprep.subr.bf16.mxu0 %v1286_v11  ;;  %1226 = vmatpush3.bf16.msra.mxu1 %v1299_v30  ;;  %v1322_v11 = vld [vmem:[%s1733_s8 + $0x30] sm:$0xff]  }
  0x15   :  { %1227 = vmatprep.subr.bf16.mxu1 %v1376_v2 }
  0x17   :  { %1185 = vmatpush3.bf16.msra.mxu0 %v1287_v13  ;;  %v1324_v13 = vld [vmem:[%s1735_s10] sm:$0xff]  }
  0x18   :  { %1186 = vmatprep.subr.bf16.mxu0 %v1288_v14  ;;  %1228 = vmatpush3.bf16.msra.mxu1 %v1300_v33  ;;  %v1325_v14 = vld [vmem:[%s1735_s10 + $0x8] sm:$0xff]  }
  0x19   :  { %1229 = vmatprep.subr.bf16.mxu1 %v1376_v2 }
  0x1b   :  { %1187 = vmatpush3.bf16.msra.mxu0 %v1289_v20  ;;  %v419_v20 = vrot.slane %v410_v16, %v418_v18 }
  0x1c   :  { %1188 = vmatprep.subr.bf16.mxu0 %v1290_v23  ;;  %1230 = vmatpush3.bf16.msra.mxu1 %v1301_v34 }
  0x1d   :  { %1231 = vmatprep.subr.bf16.mxu1 %v1376_v2 }
  0x1f   :  { %1189 = vmatpush3.bf16.msra.mxu0 %v1291_v25 }
  0x20   :  { %1259 = vmatprep.subr.bf16.mxu0 %v1376_v2  ;;  %1232 = vmatpush3.bf16.msra.mxu1 %v1302_v35  ;;  %v515_v35 = vld [vmem:[%s1726_s1] sm:$0xff] }
  0x21   :  { %1233 = vmatprep.subr.bf16.mxu1 %v1376_v2 }
  0x22   :  { %276 = vmatmul.mubr.bf16.vlgmr.msra.gmra.mrb[0].mxu0 %v106_v32 }
  0x23   :  { %1267 = vmatprep.mubr.msk.bf16.mxu0 %vm1377_vm0, %v1376_v2  ;;  %1260 = vmatpush3.bf16.msra.mxu0 %v1324_v13 }
  0x24   :  { %1234 = vmatpush3.bf16.msra.mxu1 %v1303_v36  ;;  %1261 = vmatprep.subr.bf16.mxu0 %v1376_v2 }
  0x25   :  { %466 = vmatprep.subr.bf16.mxu1 %v1306_v37  ;;  %v516_v37 = vld [vmem:[%s1726_s1 + $0x8] sm:$0xff] }
  0x27   :  { %1262 = vmatpush3.bf16.msra.mxu0 %v1325_v14 }
  0x28   :  { %1263 = vmatprep.subr.bf16.mxu0 %v1376_v2 }
  0xf5   :  { %v1190_v38 = vpop.f32.mrb[0].mxu0 }
  0xf6   :  { %v1191_v40 = vpop.f32.mrb[1].mxu0 }
  0xf7   :  { %v1192_v41 = vadd.f32 %v1191_v40, %v1190_v38  ;;  %v1193_v42 = vpop.f32.mrb[2].mxu0 }
  0xf8   :  { %v1194_v43 = vpop.f32.mrb[3].mxu0 }
  0xf9   :  { %v278_v44 = vadd.f32 %v1192_v41, %v1098_v39  ;;  %v1195_v45 = vadd.f32 %v1194_v43, %v1193_v42 }
  0xfb   :  { %v281_v46 = vadd.f32 %v1195_v45, %v1098_v39  ;;  %v284_v47 = vmax.f32 %v278_v44, 0.0  ;;  %v1326_v44 = vld [vmem:[%s1735_s10 + $0x10] sm:$0xff]   ;;  %v1327_v45 = vld [vmem:[%s1735_s10 + $0x18] sm:$0xff]  }
  0xfc   :  { %1264 = vmatpush3.bf16.msra.mxu0 %v1326_v44 }
  0xfd   :  { %v285_v48 = vmax.f32 %v281_v46, 0.0  ;;  %1265 = vmatprep.subr.bf16.mxu0 %v1376_v2  ;;  %v1330_v46 = vld [vmem:[%s1737_s12 + $0x4] ss:$8 sps:$4 sm:$0xff]  }
  0xff   :  { %v286_v50 = vpack.c.bf16 %v285_v48, %v284_v47  ;;  %v1133_v47 = vld [vmem:[%s1734_s9] ss:$0 sm:$0xff] }
 0x100   :  { %1266 = vmatpush3.bf16.msra.mxu0 %v1327_v45 }
 0x101   :  { %1236 = vmatmul.mubr.bf16.vlgmr.msra.gmra.mrb[0].mxu1 %v286_v50  ;;  %831 = vmatprep.subr.bf16.mxu0 %v1330_v46  ;;  %v1379_v46 = vmov 1966171168  }
 0x102   :  { %467 = vmatpush1.bf16.msra.mxu1 %v1304_v49  ;;  %498 = vmatprep.mubr.bf16.mxu1 %v1378_v57 }
 0x103   :  { %468 = vmatprep.subr.bf16.mxu1 %v1309_v51 }
 0x106   :  { %469 = vmatpush1.bf16.msra.mxu1 %v1307_v52 }
 0x107   :  { %470 = vmatprep.subr.bf16.mxu1 %v1312_v53 }
 0x10a   :  { %471 = vmatpush1.bf16.msra.mxu1 %v1310_v54 }
 0x10b   :  { %472 = vmatprep.subr.bf16.mxu1 %v1315_v55  ;;  %v1328_v55 = vld [vmem:[%s1737_s12] ss:$8 sps:$4 sm:$0xff]  }
 0x10e   :  { %473 = vmatpush1.bf16.msra.mxu1 %v1313_v56 }
 0x10f   :  { %1239 = vmatprep.subr.bf16.mxu1 %v1376_v2 }
 0x1d4   :  { %v392_v59 = vpop.f32.mrb[0].mxu1 }
 0x1d5   :  { %v393_v60 = vadd.f32 %v1115_v58, %v392_v59  ;;  %v1237_v61 = vpop.f32.mrb[1].mxu1  ;;  %v1331_v59 = vld [vmem:[%s1737_s12 + $0x10] ss:$8 sps:$4 sm:$0xff]  }
 0x1d6   :  { %v395_v62 = vpop.f32.mrb[2].mxu1  ;;  %v1334_v61 = vld [vmem:[%s1737_s12 + $0x20] ss:$8 sps:$4 sm:$0xff]  }
 0x1d7   :  { %v396_v63 = vadd.f32 %v1115_v58, %v395_v62  ;;  %v1238_v0 = vpop.f32.mrb[3].mxu1  ;;  %v399_v1 = vmax.f32 %v393_v60, 0.0  ;;  %v1333_v58 = vld [vmem:[%s1737_s12 + $0x14] ss:$8 sps:$4 sm:$0xff]   ;;  %v1336_v60 = vld [vmem:[%s1737_s12 + $0x24] ss:$8 sps:$4 sm:$0xff]  }
 0x1d8   :  { %v1339_v62 = vld [vmem:[%s1737_s12 + $0x34] ss:$8 sps:$4 sm:$0xff]   ;;  %v1340_v0 = vld [vmem:[%s1737_s12 + $0x40] ss:$8 sps:$4 sm:$0xff]  }
 0x1d9   :  { %v400_v3 = vmax.f32 %v396_v63, 0.0  ;;  %v1342_v63 = vld [vmem:[%s1737_s12 + $0x44] ss:$8 sps:$4 sm:$0xff]  }
 0x1db   :  { %v401_v5 = vpack.c.bf16 %v400_v3, %v399_v1  ;;  %v1345_v1 = vld [vmem:[%s1737_s12 + $0x54] ss:$8 sps:$4 sm:$0xff]   ;;  %v1343_v3 = vld [vmem:[%s1737_s12 + $0x50] ss:$8 sps:$4 sm:$0xff]  }
 0x1dd   :  { %1132 = vmatmul.mubr.msk.bf16.vlgmr.msra.gmra.mrb[4].mxu1 %vm462_vm1, %v401_v5  ;;  %v1346_v5 = vld [vmem:[%s1737_s12 + $0x60] ss:$8 sps:$4 sm:$0xff]  }
 0x1de   :  { %1240 = vmatpush3.bf16.msra.mxu1 %v1316_v4  ;;  %1255 = vmatprep.mubr.msk.bf16.mxu1 %vm1377_vm0, %v1376_v2  ;;  %v1348_v4 = vld [vmem:[%s1737_s12 + $0x64] ss:$8 sps:$4 sm:$0xff]  }
 0x1df   :  { %1241 = vmatprep.subr.bf16.mxu1 %v1376_v2 }
 0x1e2   :  { %1242 = vmatpush3.bf16.msra.mxu1 %v1317_v6  ;;  %v1351_v6 = vld [vmem:[%s1737_s12 + $0x74] ss:$8 sps:$4 sm:$0xff]  }
 0x1e3   :  { %1243 = vmatprep.subr.bf16.mxu1 %v1376_v2 }
 0x1e6   :  { %1244 = vmatpush3.bf16.msra.mxu1 %v1318_v7  ;;  %v1349_v7 = vld [vmem:[%s1737_s12 + $0x70] ss:$8 sps:$4 sm:$0xff]  }
 0x1e7   :  { %1245 = vmatprep.subr.bf16.mxu1 %v1376_v2 }
 0x1ea   :  { %1246 = vmatpush3.bf16.msra.mxu1 %v1319_v8  ;;  %v1142_v8 = vld [vmem:[%s1736_s11] ss:$0 sm:$0xff] }
 0x1eb   :  { %1247 = vmatprep.subr.bf16.mxu1 %v1376_v2 }
 0x1ee   :  { %1248 = vmatpush3.bf16.msra.mxu1 %v1320_v9 }
 0x1ef   :  { %1249 = vmatprep.subr.bf16.mxu1 %v1376_v2 }
 0x1f2   :  { %1250 = vmatpush3.bf16.msra.mxu1 %v1321_v10 }
 0x1f3   :  { %1251 = vmatprep.subr.bf16.mxu1 %v1376_v2 }
 0x1f6   :  { %1252 = vmatpush3.bf16.msra.mxu1 %v1322_v11 }
 0x1f7   :  { %1253 = vmatprep.subr.bf16.mxu1 %v1376_v2 }
 0x1fa   :  { %1254 = vmatpush3.bf16.msra.mxu1 %v1323_v12 }
 0x2b0   :  { %v500_v21 = vpop.f32.mrb[4].mxu1 }
 0x2b1   :  { %v501_v22 = vadd.f32 %v500_v21, %v415_v19  ;;  %v502_v23 = vpop.f32.mrb[5].mxu1  ;;  %v739_v21 = vld [vmem:[%s1738_s13] sm:$0x3] }
 0x2b2   :  { %v503_v24 = vadd.f32 %v502_v23, %v419_v20  ;;  %v504_v25 = vpop.f32.mrb[6].mxu1  ;;  %v748_v23 = vrot.slane %v739_v21, %v418_v18 }
 0x2b3   :  { %v505_v26 = vadd.f32 %v504_v25, %v415_v19  ;;  %v506_v27 = vpop.f32.mrb[7].mxu1 }
 0x2b4   :  { %v509_v28 = vmul.f32 0.5, %v503_v24  ;;  %v968_v29 = vcombine.low %v501_v22, %v503_v24  ;;  %v507_v30 = vadd.f32 %v506_v27, %v419_v20 }
 0x2b6   :  { %v511_v31 = vmul.f32 1.442695, %v509_v28  ;;  %1170 = vst.sshfl [vmem:[#allocation3] sm:$0x33 pattern:$0x76325410] %v968_v29 }
 0x2b7   :  { %v510_v32 = vmul.f32 0.5, %v507_v30 }
 0x2b8   :  { %1352 = vpow2.f32 %v511_v31 }
 0x2b9   :  { %v513_v33 = vmul.f32 1.442695, %v510_v32 }
 0x2bb   :  { %1354 = vpow2.f32 %v513_v33 }
 0x2bd   :  { %v1070_v34 = vld [vmem:[#allocation3] sm:$0xf] }
 0x2be   :  { %1071 = vst [vmem:[%s1740_s15] sm:$0xf] %v1070_v34 }
 0x2c2   :  { %v1353_v36 = vpop.eup %1352 }
 0x2c3   :  { %v517_v38 = vmul.f32 %v1353_v36, %v515_v35 }
 0x2c5   :  { %v1355_v39 = vpop.eup %1354  ;;  %v519_v41 = vadd.f32 %v517_v38, %v501_v22  ;;  %v744_v22 = vrot.slane %v739_v21, %v414_v15 }
 0x2c6   :  { %v518_v40 = vmul.f32 %v1355_v39, %v516_v37 }
 0x2c8   :  { %v520_v42 = vadd.f32 %v518_v40, %v505_v26 }
 0x2ca   :  { %v521_v43 = vpack.c.bf16 %v520_v42, %v519_v41 }
 0x2cc   :  { %1256 = vmatmul.mubr.bf16.vlgmr.msra.gmra.mrb[8].mxu1 %v521_v43 }
 0x39f   :  { %v627_v48 = vpop.f32.mrb[8].mxu1 }
 0x3a0   :  { %v628_v49 = vadd.f32 %v1133_v47, %v627_v48  ;;  %v1257_v50 = vpop.f32.mrb[9].mxu1 }
 0x3a1   :  { %v630_v51 = vpop.f32.mrb[10].mxu1 }
 0x3a2   :  { %v631_v52 = vadd.f32 %v1133_v47, %v630_v51  ;;  %v1258_v2 = vpop.f32.mrb[11].mxu1  ;;  %v634_v53 = vmax.f32 %v628_v49, 0.0  ;;  %v901_v47 = vunpack.c.l.s4 %v1379_v46 }
 0x3a4   :  { %v635_v54 = vmax.f32 %v631_v52, 0.0  ;;  %v902_v48 = vunpack.c.0.s8 %v901_v47 }
 0x3a6   :  { %v636_v56 = vpack.c.bf16 %v635_v54, %v634_v53  ;;  %v905_v50 = vsub.s32 %v902_v48, %v1506_v17 }
 0x3a8   :  { %1268 = vmatmul.mubr.msk.bf16.vlgmr.msra.gmra.mrb[4].mxu0 %vm462_vm1, %v636_v56 }
 0x3a9   :  { %832 = vmatpush1.bf16.msra.mxu0 %v1328_v55  ;;  %863 = vmatprep.mubr.bf16.mxu0 %v1378_v57  ;;  %v1337_v57 = vld [vmem:[%s1737_s12 + $0x30] ss:$8 sps:$4 sm:$0xff]  }
 0x3aa   :  { %833 = vmatprep.subr.bf16.mxu0 %v1333_v58 }
 0x3ad   :  { %834 = vmatpush1.bf16.msra.mxu0 %v1331_v59 }
 0x3ae   :  { %835 = vmatprep.subr.bf16.mxu0 %v1336_v60 }
 0x3b1   :  { %836 = vmatpush1.bf16.msra.mxu0 %v1334_v61 }
 0x3b2   :  { %837 = vmatprep.subr.bf16.mxu0 %v1339_v62 }
 0x3b5   :  { %838 = vmatpush1.bf16.msra.mxu0 %v1337_v57 }
 0x3b6   :  { %839 = vmatprep.subr.bf16.mxu0 %v1342_v63 }
 0x3b9   :  { %840 = vmatpush1.bf16.msra.mxu0 %v1340_v0 }
 0x3ba   :  { %841 = vmatprep.subr.bf16.mxu0 %v1345_v1 }
 0x3bd   :  { %842 = vmatpush1.bf16.msra.mxu0 %v1343_v3 }
 0x3be   :  { %843 = vmatprep.subr.bf16.mxu0 %v1348_v4 }
 0x3c1   :  { %844 = vmatpush1.bf16.msra.mxu0 %v1346_v5 }
 0x3c2   :  { %845 = vmatprep.subr.bf16.mxu0 %v1351_v6 }
 0x3c5   :  { %846 = vmatpush1.bf16.msra.mxu0 %v1349_v7 }
 0x47b   :  { %v713_v9 = vpop.f32.mrb[4].mxu0 }
 0x47c   :  { %v714_v10 = vadd.f32 %v1142_v8, %v713_v9  ;;  %v1269_v11 = vpop.f32.mrb[5].mxu0 }
 0x47d   :  { %v716_v12 = vpop.f32.mrb[6].mxu0 }
 0x47e   :  { %v717_v13 = vadd.f32 %v1142_v8, %v716_v12  ;;  %v1270_v14 = vpop.f32.mrb[7].mxu0  ;;  %v720_v16 = vmax.f32 %v714_v10, 0.0 }
 0x480   :  { %v721_v19 = vmax.f32 %v717_v13, 0.0 }
 0x482   :  { %v722_v20 = vpack.c.bf16 %v721_v19, %v720_v16 }
 0x484   :  { %864 = vmatmul.mubr.bf16.vlgmr.msra.gmra.mrb[8].mxu0 %v722_v20 }
 0x557   :  { %v865_v24 = vpop.f32.mrb[8].mxu0 }
 0x558   :  { %v866_v25 = vadd.f32 %v865_v24, %v744_v22  ;;  %v867_v26 = vpop.f32.mrb[9].mxu0 }
 0x559   :  { %v868_v27 = vadd.f32 %v867_v26, %v748_v23  ;;  %v869_v28 = vpop.f32.mrb[10].mxu0 }
 0x55a   :  { %v874_v29 = vsub.f32 0.0, %v866_v25  ;;  %v870_v30 = vadd.f32 %v869_v28, %v744_v22  ;;  %v871_v31 = vpop.f32.mrb[11].mxu0 }
 0x55b   :  { %v875_v32 = vsub.f32 0.0, %v868_v27  ;;  %v872_v33 = vadd.f32 %v871_v31, %v748_v23 }
 0x55c   :  { %v878_v34 = vmul.f32 1.442695, %v874_v29  ;;  %v876_v35 = vsub.f32 0.0, %v870_v30 }
 0x55d   :  { %v880_v36 = vmul.f32 1.442695, %v875_v32  ;;  %v877_v37 = vsub.f32 0.0, %v872_v33 }
 0x55e   :  { %1356 = vpow2.f32 %v878_v34  ;;  %v882_v38 = vmul.f32 1.442695, %v876_v35 }
 0x55f   :  { %1358 = vpow2.f32 %v880_v36  ;;  %v884_v15 = vmul.f32 1.442695, %v877_v37 }
 0x560   :  { %1360 = vpow2.f32 %v882_v38 }
 0x561   :  { %1362 = vpow2.f32 %v884_v15 }
 0x568   :  { %v1357_v18 = vpop.eup %1356 }
 0x569   :  { %v1359_v39 = vpop.eup %1358  ;;  %v886_v40 = vadd.f32 1.0, %v1357_v18 }
 0x56a   :  { %v1361_v41 = vpop.eup %1360  ;;  %v887_v42 = vadd.f32 1.0, %v1359_v39 }
 0x56b   :  { %v1363_v43 = vpop.eup %1362  ;;  %1364 = vrcp.f32 %v886_v40  ;;  %v888_v44 = vadd.f32 1.0, %v1361_v41 }
 0x56c   :  { %1366 = vrcp.f32 %v887_v42  ;;  %v889_v45 = vadd.f32 1.0, %v1363_v43 }
 0x56d   :  { %1368 = vrcp.f32 %v888_v44 }
 0x56e   :  { %1370 = vrcp.f32 %v889_v45 }
 0x575   :  { %v1365_v49 = vpop.eup %1364 }
 0x576   :  { %v1367_v51 = vpop.eup %1366 }
 0x577   :  { %v1369_v52 = vpop.eup %1368  ;;  %v1164_v2 = vpack.c.bf16 %v1367_v51, %v1365_v49 }
 0x578   :  { %v1371_v53 = vpop.eup %1370 }
 0x579   :  { %v906_v54 = vrot.slane %v1164_v2, %v905_v50 }
 0x57b   :  { %1166 = vst.sshfl [vmem:[#allocation2] sm:$0x5 pattern:$0x73625140] %v906_v54 }
 0x582   :  { %v1037_v55 = vld [vmem:[#allocation2] sm:$0x3] }
 0x583   :  { %1038 = vst [vmem:[%s1739_s14] sm:$0x3] %v1037_v55 }

</bundles_post_ra>
